<compile_context>
chip_gen: v7x
topology: tpu7x:2x2x1
jax: 0.10.0
libtpu: 0.0.40
codegen_flags: <defaults>
</compile_context>

<pallas_src>
import functools

import jax
import jax.numpy as jnp
from jax.experimental import pallas as pl
from jax.experimental.pallas import tpu as pltpu


def _round_up(x: int, m: int) -> int:
    return ((x + m - 1) // m) * m


def _vmem_budget_bytes() -> int:
    """Scoped-VMEM budget derived from the physical VMEM of this chip."""
    cap = 64 * 1024 * 1024  # conservative default (v7x physical VMEM / TC)
    try:
        info = pltpu.get_tpu_info()
        cap = int(getattr(info, "vmem_capacity_bytes", cap))
    except Exception:
        pass
    # 96 MiB on 128 MiB parts (v5e/v6e), 48 MiB on v7x; leave headroom for
    # compiler temporaries and semaphores.
    return min(96 * 1024 * 1024, (cap * 3) // 4)


def _fits(tb: int, tc: int, H: int, x_bytes: int, budget: int) -> bool:
    """Rough double-buffered VMEM footprint for one (tb, tc) grid step."""
    need = (2 * tb * H * x_bytes          # x blocks (input dtype)
            + 2 * H * tc * 2              # W blocks, bf16
            + 2 * 8 * tc * 4              # bias blocks (sublane-padded)
            + 2 * tb * 128 * 4            # label blocks (lane-padded)
            + 2 * tb * 128 * 4            # output blocks (lane-padded)
            + 3 * tb * 128 * 4            # m/l/t scratch (lane-padded)
            + 4 * tb * tc * 4)            # in-kernel f32 temporaries headroom
    return need <= budget


def _pick_tiles(B: int, H: int, C: int, x_bytes: int, budget: int):
    """Largest (tb, tc) that fits the VMEM budget.  Lane tile multiple of 128,
    batch tile multiple of 8 (capped by the padded batch)."""
    b8 = _round_up(B, 8)
    tc0 = min(512, _round_up(C, 128))
    tc_cands = [t for t in (tc0, 256, 128) if t <= tc0]
    for tc in tc_cands:
        for cand in (1024, 512, 256, 128, 64, 32, 16, 8):
            tb = min(cand, b8)
            if _fits(tb, tc, H, x_bytes, budget):
                return tb, tc
    # TODO(synk): for extreme H add an H (K) reduction grid axis / emit_pipeline
    # over H instead of falling back to the smallest tiles.
    return min(8, b8), 128


def _xent_single_kernel(x_ref, w_ref, b_ref, lab_ref, nll_ref):
    """One batch block, all classes in one lane tile: one-pass logsumexp.
    Padded class lanes carry a -1e30 bias (added in the wrapper), so no
    in-kernel mask is needed and exp underflows them to zero."""
    logits = jnp.dot(x_ref[...].astype(jnp.bfloat16), w_ref[...],
                     preferred_element_type=jnp.float32) + b_ref[...]
    m = jnp.max(logits, axis=-1, keepdims=True)
    lse = m + jnp.log(jnp.sum(jnp.exp(logits - m), axis=-1, keepdims=True))
    col = jax.lax.broadcasted_iota(jnp.int32, logits.shape, 1)
    tgt = jnp.sum(jnp.where(col == lab_ref[...], logits, 0.0),
                  axis=-1, keepdims=True)
    nll_ref[...] = (lse - tgt).astype(nll_ref.dtype)


def _xent_online_kernel(x_ref, w_ref, b_ref, lab_ref, nll_ref,
                        m_scr, l_scr, t_scr):
    """grid = (batch blocks, class blocks); class axis is the reduction axis
    (flash-style online logsumexp), batch axis is parallel."""
    ci = pl.program_id(1)

    @pl.when(ci == 0)
    def _init():
        m_scr[...] = jnp.full_like(m_scr, -jnp.inf)   # running max
        l_scr[...] = jnp.zeros_like(l_scr)            # running sum(exp)
        t_scr[...] = jnp.zeros_like(t_scr)            # target logit

    # bf16 operands on the MXU, f32 accumulation, f32 bias add.  Padded class
    # lanes are pushed to ~-1e30 by the pre-padded bias (no mask needed).
    logits = jnp.dot(x_ref[...].astype(jnp.bfloat16), w_ref[...],
                     preferred_element_type=jnp.float32) + b_ref[...]

    # Online logsumexp update.
    m_prev = m_scr[...]
    m_new = jnp.maximum(m_prev, jnp.max(logits, axis=-1, keepdims=True))
    p = jnp.exp(logits - m_new)
    l_scr[...] = (jnp.exp(m_prev - m_new) * l_scr[...]
                  + jnp.sum(p, axis=-1, keepdims=True))
    m_scr[...] = m_new

    # Target-logit term without a one-hot input: global class iota == label.
    tc = logits.shape[-1]
    col = ci * tc + jax.lax.broadcasted_iota(jnp.int32, logits.shape, 1)
    t_scr[...] += jnp.sum(jnp.where(col == lab_ref[...], logits, 0.0),
                          axis=-1, keepdims=True)

    @pl.when(ci == pl.num_programs(1) - 1)
    def _fin():
        # per-example NLL = logsumexp(logits) - logit[label]
        nll_ref[...] = (m_scr[...] + jnp.log(l_scr[...]) - t_scr[...]
                        ).astype(nll_ref.dtype)


def _cross_entropy_loss_pallas(x, w, b, labels):
    """Mean cross-entropy of a linear classifier, computed with Pallas.

    x: [B, H] float, w: [H, C] float, b: [1, C] float, labels: [B] int.
    Returns a scalar f32 loss.
    """
    B, H = x.shape
    Hw, C = w.shape
    assert Hw == H

    budget = _vmem_budget_bytes()
    tb, tc = _pick_tiles(B, H, C, x.dtype.itemsize, budget)
    c_pad = _round_up(C, tc)
    b_pad = _round_up(B, tb)
    nb, nc = b_pad // tb, c_pad // tc

    # W is re-streamed once per batch block -> pad + cast to bf16 once at the
    # boundary.  Bias padding uses a large negative constant so padded class
    # lanes vanish from the softmax denominator with no in-kernel mask.
    w_p = jnp.pad(w, ((0, 0), (0, c_pad - C))).astype(jnp.bfloat16)
    b_p = jnp.pad(b.astype(jnp.float32), ((0, 0), (0, c_pad - C)),
                  constant_values=-1e30)

    # x stays in its input dtype (read once; cast per block inside the
    # kernel).  Pad the batch only when the tile doesn't divide it.
    lab_i32 = labels.astype(jnp.int32)
    if b_pad != B:
        x_in = jnp.pad(x, ((0, b_pad - B), (0, 0)))
        lab_in = jnp.pad(lab_i32, (0, b_pad - B))
    else:
        x_in, lab_in = x, lab_i32
    lab_in = lab_in.reshape(b_pad, 1)
    # TODO(synk): no in-kernel label range check (PyTorch CE would error on
    # out-of-range labels); out-of-range labels here yield logsumexp-only NLL.

    if nc == 1:
        # Single class block: skip scratch / correction / pl.when phases.
        nll = pl.pallas_call(
            _xent_single_kernel,
            out_shape=jax.ShapeDtypeStruct((b_pad, 1), jnp.float32),
            grid_spec=pltpu.PrefetchScalarGridSpec(
                num_scalar_prefetch=0,
                grid=(nb,),
                in_specs=[
                    pl.BlockSpec((tb, H), lambda bi: (bi, 0)),   # x
                    pl.BlockSpec((H, tc), lambda bi: (0, 0)),    # W
                    pl.BlockSpec((1, tc), lambda bi: (0, 0)),    # bias
                    pl.BlockSpec((tb, 1), lambda bi: (bi, 0)),   # labels
                ],
                out_specs=pl.BlockSpec((tb, 1), lambda bi: (bi, 0)),
            ),
            compiler_params=pltpu.CompilerParams(
                dimension_semantics=("parallel",),
                vmem_limit_bytes=budget,
            ),
        )(x_in, w_p, b_p, lab_in)
    else:
        nll = pl.pallas_call(
            _xent_online_kernel,
            out_shape=jax.ShapeDtypeStruct((b_pad, 1), jnp.float32),
            grid_spec=pltpu.PrefetchScalarGridSpec(
                num_scalar_prefetch=0,
                grid=(nb, nc),
                in_specs=[
                    pl.BlockSpec((tb, H), lambda bi, ci: (bi, 0)),   # x
                    pl.BlockSpec((H, tc), lambda bi, ci: (0, ci)),   # W
                    pl.BlockSpec((1, tc), lambda bi, ci: (0, ci)),   # bias
                    pl.BlockSpec((tb, 1), lambda bi, ci: (bi, 0)),   # labels
                ],
                out_specs=pl.BlockSpec((tb, 1), lambda bi, ci: (bi, 0)),
                scratch_shapes=[pltpu.VMEM((tb, 1), jnp.float32)] * 3,  # m,l,t
            ),
            compiler_params=pltpu.CompilerParams(
                # batch blocks independent -> parallel (megacore on v7x when
                # nb >= 2); class axis carries the scratch -> arbitrary.
                dimension_semantics=("parallel", "arbitrary"),
                vmem_limit_bytes=budget,
            ),
        )(x_in, w_p, b_p, lab_in)

    # Mean over the *global* (unpadded) batch; multiply by 1/B, no divide.
    return jnp.sum(nll[:B, 0]) * (1.0 / B)


# One jit over pad/cast + pallas_call + reduction: single dispatch per step.
_jitted_xent_loss = jax.jit(_cross_entropy_loss_pallas)


class InnerLinearClassifier:
    """Deterministic synthetic inner module: Linear(H, C) + cross-entropy."""

    def __init__(self, hidden: int, num_classes: int, key):
        kw, kb = jax.random.split(key)
        self.w = (jax.random.normal(kw, (hidden, num_classes), jnp.float32)
                  / jnp.sqrt(hidden))
        self.b = jax.random.normal(kb, (1, num_classes), jnp.float32) * 0.01
        self.num_classes = num_classes

    def forward(self, x, labels):
        loss = _jitted_xent_loss(x, self.w, self.b, labels)
        return {"loss": loss}


class TrainableModel:
    """JAX/Pallas port of catwalk's TrainableModel forward semantics."""

    def __init__(self, inner_module=None):
        self.inner_module = inner_module

    def forward(self, *args, **kwargs):
        if self.inner_module is None:
            raise NotImplementedError(
                "If you want to be able to pass None as the inner_module to "
                "TrainableModule, you need to override the forward() method.")
        return self.inner_module.forward(*args, **kwargs)

    # TODO(synk): collate_for_training / predict / calculate_metrics are
    # host-side data plumbing (tasks, metrics, dataloaders) with no Pallas
    # equivalent; not implemented here.
    def trainable_copy(self, **kwargs):
        import copy
        return copy.deepcopy(self)


if __name__ == "__main__":
    key = jax.random.PRNGKey(0)
    k_x, k_lab, k_par = jax.random.split(key, 3)

    batch, hidden, num_classes = 8, 32, 16
    x = jax.random.normal(k_x, (batch, hidden), jnp.float32)
    labels = jax.random.randint(k_lab, (batch,), 0, num_classes)

    model = TrainableModel(InnerLinearClassifier(hidden, num_classes, k_par))
    out = model.forward(x, labels)
    loss = jax.block_until_ready(out["loss"])

    # Pure-JAX reference with the same bf16-operand / f32-accum matmul.
    logits = jnp.dot(x.astype(jnp.bfloat16),
                     model.inner_module.w.astype(jnp.bfloat16),
                     preferred_element_type=jnp.float32) + model.inner_module.b
    ref = -jnp.mean(
        jnp.take_along_axis(jax.nn.log_softmax(logits, axis=-1),
                            labels[:, None], axis=-1))
    assert jnp.allclose(loss, ref, atol=2e-3, rtol=1e-3), (loss, ref)

    print("KERNEL_OK")
</pallas_src>

<mosaic_0001>
module attributes {stable_mosaic.version = 11 : i64} {
  func.func @_xent_single_kernel(%arg0: i32, %arg1: memref<8x32xf32, #tpu.memory_space<vmem>>, %arg2: memref<32x128xbf16, #tpu.memory_space<vmem>>, %arg3: memref<1x128xf32, #tpu.memory_space<vmem>>, %arg4: memref<8x1xi32, #tpu.memory_space<vmem>>, %arg5: memref<8x1xf32, #tpu.memory_space<vmem>>) attributes {dimension_semantics = [#tpu.dimension_semantics<parallel>], iteration_bounds = array<i64: 1>, scalar_prefetch = 0 : i64, scratch_operands = 0 : i64, tpu.core_type = #tpu.core_type<tc>, window_params = [{transform_indices = @transform_0, window_bounds = array<i64: 8, 32>}, {pipeline_mode = #tpu.pipeline_mode<synchronous>, transform_indices = @transform_1, window_bounds = array<i64: 32, 128>}, {pipeline_mode = #tpu.pipeline_mode<synchronous>, transform_indices = @transform_2, window_bounds = array<i64: 1, 128>}, {transform_indices = @transform_3, window_bounds = array<i64: 8, 1>}, {transform_indices = @transform_4, window_bounds = array<i64: 8, 1>}]} {
    %c0 = arith.constant 0 : index
    %c0_0 = arith.constant 0 : index
    %0 = vector.load %arg1[%c0, %c0_0] : memref<8x32xf32, #tpu.memory_space<vmem>>, vector<8x32xf32>
    %1 = arith.truncf %0 : vector<8x32xf32> to vector<8x32xbf16>
    %c0_1 = arith.constant 0 : index
    %c0_2 = arith.constant 0 : index
    %2 = vector.load %arg2[%c0_1, %c0_2] : memref<32x128xbf16, #tpu.memory_space<vmem>>, vector<32x128xbf16>
    %cst = arith.constant dense<0.000000e+00> : vector<8x128xf32>
    %3 = tpu.matmul %1, %2, %cst {dimension_numbers = #tpu.dot_dimension_numbers<[1], [0], [0], [1], [0, 0, 1, 1], [], []>} : vector<8x32xbf16>, vector<32x128xbf16>, vector<8x128xf32> -> vector<8x128xf32>
    %c0_3 = arith.constant 0 : index
    %c0_4 = arith.constant 0 : index
    %4 = vector.load %arg3[%c0_3, %c0_4] : memref<1x128xf32, #tpu.memory_space<vmem>>, vector<1x128xf32>
    %5 = vector.broadcast %4 : vector<1x128xf32> to vector<8x128xf32>
    %6 = arith.addf %3, %5 : vector<8x128xf32>
    %cst_5 = arith.constant dense<0xFF800000> : vector<8xf32>
    %7 = vector.multi_reduction <maximumf>, %6, %cst_5 [1] : vector<8x128xf32> to vector<8xf32>
    %8 = vector.shape_cast %7 : vector<8xf32> to vector<8x1xf32>
    %9 = vector.broadcast %8 : vector<8x1xf32> to vector<8x128xf32>
    %10 = arith.subf %6, %9 : vector<8x128xf32>
    %11 = math.exp %10 : vector<8x128xf32>
    %cst_6 = arith.constant dense<0.000000e+00> : vector<8xf32>
    %12 = vector.multi_reduction <add>, %11, %cst_6 [1] : vector<8x128xf32> to vector<8xf32>
    %13 = vector.shape_cast %12 : vector<8xf32> to vector<8x1xf32>
    %14 = math.log %13 : vector<8x1xf32>
    %15 = arith.addf %8, %14 : vector<8x1xf32>
    %16 = tpu.iota {dimensions = array<i32: 1>} : vector<8x128xi32>
    %c0_7 = arith.constant 0 : index
    %c0_8 = arith.constant 0 : index
    %17 = vector.load %arg4[%c0_7, %c0_8] : memref<8x1xi32, #tpu.memory_space<vmem>>, vector<8x1xi32>
    %18 = vector.broadcast %17 : vector<8x1xi32> to vector<8x128xi32>
    %19 = arith.cmpi eq, %16, %18 : vector<8x128xi32>
    %cst_9 = arith.constant 0.000000e+00 : f32
    %20 = vector.broadcast %cst_9 : f32 to vector<8x128xf32>
    %21 = arith.select %19, %6, %20 : vector<8x128xi1>, vector<8x128xf32>
    %cst_10 = arith.constant dense<0.000000e+00> : vector<8xf32>
    %22 = vector.multi_reduction <add>, %21, %cst_10 [1] : vector<8x128xf32> to vector<8xf32>
    %23 = vector.shape_cast %22 : vector<8xf32> to vector<8x1xf32>
    %24 = arith.subf %15, %23 : vector<8x1xf32>
    %c0_11 = arith.constant 0 : index
    %c0_12 = arith.constant 0 : index
    %25 = vector.load %arg5[%c0_11, %c0_12] : memref<8x1xf32, #tpu.memory_space<vmem>>, vector<8x1xf32>
    tpu.vector_store %arg5[%c0_11, %c0_12], %24 {strides = array<i32>} : memref<8x1xf32, #tpu.memory_space<vmem>>, vector<8x1xf32>,
    return
  }
  func.func @transform_0(%arg0: i32) -> (i32, i32) {
    %c0_i32 = arith.constant 0 : i32
    %c0_i32_0 = arith.constant 0 : i32
    return %arg0, %c0_i32 : i32, i32
  }
  func.func @transform_1(%arg0: i32) -> (i32, i32) {
    %c0_i32 = arith.constant 0 : i32
    %c0_i32_0 = arith.constant 0 : i32
    %c0_i32_1 = arith.constant 0 : i32
    return %c0_i32, %c0_i32_0 : i32, i32
  }
  func.func @transform_2(%arg0: i32) -> (i32, i32) {
    %c0_i32 = arith.constant 0 : i32
    %c0_i32_0 = arith.constant 0 : i32
    %c0_i32_1 = arith.constant 0 : i32
    return %c0_i32, %c0_i32_0 : i32, i32
  }
  func.func @transform_3(%arg0: i32) -> (i32, i32) {
    %c0_i32 = arith.constant 0 : i32
    %c0_i32_0 = arith.constant 0 : i32
    return %arg0, %c0_i32 : i32, i32
  }
  func.func @transform_4(%arg0: i32) -> (i32, i32) {
    %c0_i32 = arith.constant 0 : i32
    %c0_i32_0 = arith.constant 0 : i32
    return %arg0, %c0_i32 : i32, i32
  }
}

</mosaic_0001>

<bundles_post_ra>
// kernel: _cross_entropy_loss_pallas.1
= control target key start
LH: loop header
LB: loop body
LE: loop exit
PB: predicated region body
PF: predicated region fallthrough
CT: control target
= control target key end

     0   :  { %v139_v0 = vmov 0.0   ;;  %vm140_vm0 = vmmov 0   ;;  %vm43_vm1 = vcmask 261120   ;;  %v141_v5 = vmov 0   ;;  %s185_s1 = inlined_call_operand.vmem [shape: bf16[32,128], index: 1, kind: input, shape index: {}]   ;;  %s186_s0 = inlined_call_operand.vmem [shape: f32[8,32], index: 0, kind: input, shape index: {}]   ;;  %s187_s2 = inlined_call_operand.vmem [shape: f32[1,128], index: 2, kind: input, shape index: {}]   ;;  %s188_s3 = inlined_call_operand.vmem [shape: s32[8,1], index: 3, kind: input, shape index: {}]   ;;  %s189_s4 = inlined_call_operand.vmem [shape: f32[8,1], index: 4, kind: output, shape index: {}]  }
   0x1   :  { %121 = vmatprep.subr.bf16.mxu0 %v139_v0  ;;  %v133_v1 = vld [vmem:[%s185_s1] sm:$0xff]   ;;  %125 = vmatprep.mubr.msk.bf16.mxu0 %vm140_vm0, %v139_v0  ;;  %v134_v2 = vld [vmem:[%s185_s1 + $0x8] sm:$0xff]   ;;  %v97_v16 = vlaneseq  ;;  %vm108_vm3 = vcmask 7168  }
   0x2   :  { %122 = vmatpush3.bf16.msra.mxu0 %v133_v1  ;;  %v18_v3 = vld [vmem:[%s186_s0] sm:$0xff]  ;;  %132 = vset.pattern.permute.xlu0 %v141_v5 }
   0x3   :  { %123 = vmatprep.subr.bf16.mxu0 %v139_v0  ;;  %v19_v4 = vpack.c.bf16 %v18_v3, %v18_v3  ;;  %v114_v6 = vld [vmem:[%s187_s2] ss:$0 sm:$0xff]  ;;  %v98_v17 = vand.u32 127, %v97_v16 }
   0x4   :  { %v99_v12 = vld [vmem:[%s188_s3] sm:$0xff] }
   0x6   :  { %124 = vmatpush3.bf16.msra.mxu0 %v134_v2 }
   0x9   :  { %126 = vmatmul.mubr.msk.bf16.vlgmr.msra.gmra.mrb[0].mxu0 %vm43_vm1, %v19_v4 }
  0xdc   :  { %v81_v7 = vpop.f32.mrb[0].mxu0 }
  0xdd   :  { %v82_v8 = vadd.f32 %v114_v6, %v81_v7  ;;  %v127_v9 = vpop.f32.mrb[1].mxu0 }
  0xde   :  { %v84_v10 = vpop.f32.mrb[2].mxu0 }
  0xdf   :  { %87 = vmax.xlane.f32.xlu0 %v82_v8  ;;  %v128_v11 = vpop.f32.mrb[3].mxu0 }
  0xf5   :  { %101 = vperm.xlu0 %132, %v99_v12  }
 0x16c   :  { %v88_v13 = vpop.xlane.xlu0 %87 }
 0x16d   :  { %v89_v14 = vsub.f32 %v82_v8, %v88_v13 }
 0x16f   :  { %v90_v15 = vmul.f32 1.442695, %v89_v14 }
 0x171   :  { %135 = vpow2.f32 %v90_v15 }
 0x174   :  { %v102_v18 = vpop.permute.xlu0 %101 }
 0x175   :  { %vm103_vm2 = vcmp.eq.s32.totalorder %v98_v17, %v102_v18 }
 0x176   :  { %v104_v20 = vsel %vm103_vm2, %v82_v8, 0.0 }
 0x17b   :  { %v136_v19 = vpop.eup %135 }
 0x17c   :  { %92 = vadd.xlane.f32.xlu1 %v136_v19 }
 0x180   :  { %105 = vadd.xlane.f32.xlu1 %v104_v20 }
 0x209   :  { %v93_v21 = vpop.xlane.xlu1 %92 }
 0x20a   :  { %137 = vlog2.f32 %v93_v21 }
 0x20d   :  { %v106_v25 = vpop.xlane.xlu1 %105 }
 0x214   :  { %v138_v22 = vpop.eup %137 }
 0x215   :  { %v95_v23 = vmul.f32 0.6931472, %v138_v22 }
 0x217   :  { %v96_v24 = vadd.f32 %v95_v23, %v88_v13 }
 0x219   :  { %v107_v26 = vsub.f32 %v96_v24, %v106_v25 }
 0x21b   :  { %109 = vst.msk [vmem:[%s189_s4] sm:$0xff] %vm108_vm3, %v107_v26 }

</bundles_post_ra>
